<compile_context>
chip_gen: v7x
topology: tpu7x:2x2x1
jax: 0.10.0
libtpu: 0.0.40
codegen_flags: <defaults>
</compile_context>

<pallas_src>
import functools

import jax
import jax.numpy as jnp
from jax.experimental import pallas as pl
from jax.experimental.pallas import tpu as pltpu


# ----------------------------------------------------------------------------
# Kernel 1: fused feature transform  T[j] = Hin @ W[j],  j in {0, 1, root}
# ----------------------------------------------------------------------------
def transform_kernel(h_ref, w_ref, t_ref):
    # h_ref : (tm, Fin)        w_ref : (1, Fin, Fout)      t_ref : (1, tm, Fout)
    t_ref[0] = jnp.dot(h_ref[...], w_ref[0], preferred_element_type=jnp.float32)


def feature_transform(h, w_stk, *, tm):
    """h: (N, Fin) f32, w_stk: (3, Fin, Fout) f32 -> T: (3, N, Fout) f32."""
    n, fin = h.shape
    _, _, fout = w_stk.shape
    return pl.pallas_call(
        transform_kernel,
        out_shape=jax.ShapeDtypeStruct((3, n, fout), jnp.float32),
        grid_spec=pltpu.PrefetchScalarGridSpec(
            num_scalar_prefetch=0,
            grid=(n // tm, 3),
            in_specs=[
                # Same row tile re-used for all 3 weights (inner axis) -> DMA skipped.
                pl.BlockSpec((tm, fin), lambda i, j: (i, 0)),
                pl.BlockSpec((1, fin, fout), lambda i, j: (j, 0, 0)),
            ],
            out_specs=pl.BlockSpec((1, tm, fout), lambda i, j: (j, i, 0)),
        ),
        compiler_params=pltpu.CompilerParams(
            dimension_semantics=("parallel", "arbitrary"),
            vmem_limit_bytes=32 * 1024 * 1024,
        ),
    )(h, w_stk)


# ----------------------------------------------------------------------------
# Kernel 2: tiled spline aggregation + root + bias + activation
#   acc(i) = sum_k A_cat[i, k] @ M[k]      (k-reduction, f32 accumulator)
#   out(i) = act(acc(i) + R(i) + b)        (fused at last k step)
# ----------------------------------------------------------------------------
def spline_agg_kernel(a_ref, m_ref, r_ref, b_ref, o_ref, acc_ref, *, activation):
    k = pl.program_id(1)

    @pl.when(k == 0)
    def _init():
        acc_ref[...] = jnp.zeros_like(acc_ref)

    # A tile is stored bf16 (halves HBM traffic); compute/accumulate in f32.
    a = a_ref[...].astype(jnp.float32)
    acc_ref[...] += jnp.dot(a, m_ref[...], preferred_element_type=jnp.float32)

    @pl.when(k == pl.num_programs(1) - 1)
    def _finalize():
        z = acc_ref[...] + r_ref[...] + b_ref[...]
        if activation == "elu":
            # expm1 for precision near 0; min() keeps the dead branch finite.
            o_ref[...] = jnp.where(z > 0.0, z, jnp.expm1(jnp.minimum(z, 0.0)))
        else:  # log_softmax over the class (lane) axis
            zmax = jnp.max(z, axis=-1, keepdims=True)
            zs = z - zmax
            lse = jnp.log(jnp.sum(jnp.exp(zs), axis=-1, keepdims=True))
            o_ref[...] = zs - lse


def spline_conv_layer(a_cat, t, bias, *, activation, tm, tk):
    """a_cat: (N, 2N) bf16, t: (3, N, Fout) f32, bias: (1, Fout) f32 -> (N, Fout) f32."""
    n = a_cat.shape[0]
    fout = t.shape[-1]
    m = t[:2].reshape(2 * n, fout)   # [Hin@W0 ; Hin@W1]  (contiguous, free reshape)
    r = t[2]                         # Hin@Wr (root term)
    return pl.pallas_call(
        functools.partial(spline_agg_kernel, activation=activation),
        out_shape=jax.ShapeDtypeStruct((n, fout), jnp.float32),
        grid_spec=pltpu.PrefetchScalarGridSpec(
            num_scalar_prefetch=0,
            grid=(n // tm, (2 * n) // tk),
            in_specs=[
                pl.BlockSpec((tm, tk), lambda i, k: (i, k)),       # A_cat tile (bf16)
                pl.BlockSpec((tk, fout), lambda i, k: (k, 0)),     # transformed msgs
                pl.BlockSpec((tm, fout), lambda i, k: (i, 0)),     # root term (resident)
                pl.BlockSpec((1, fout), lambda i, k: (0, 0)),      # bias (resident)
            ],
            out_specs=pl.BlockSpec((tm, fout), lambda i, k: (i, 0)),
            scratch_shapes=[pltpu.VMEM((tm, fout), jnp.float32)],
        ),
        compiler_params=pltpu.CompilerParams(
            # row axis parallel (megacore-shardable on v7x), k axis is the reduction.
            dimension_semantics=("parallel", "arbitrary"),
            vmem_limit_bytes=32 * 1024 * 1024,
        ),
    )(a_cat, m, r, bias)


# ----------------------------------------------------------------------------
# Glue: dense, degree-normalised, basis-weighted adjacency  A_cat = [A0 | A1]
# ----------------------------------------------------------------------------
def build_spline_adjacency(edge_index, edge_attr, num_nodes):
    """dim=1, kernel_size=2, degree=1, open spline, mean aggregation.
    Columns [0:N] accumulate (1-u_e), columns [N:2N] accumulate u_e for every
    edge src->dst; rows divided by in-degree (duplicate edges are counted, i.e.
    averaged over, matching scatter-mean; zero-degree rows stay 0).
    Stored in bf16 (the only large operand) to halve HBM/VMEM traffic."""
    src = edge_index[0]
    dst = edge_index[1]
    u = edge_attr[:, 0]
    deg = jnp.zeros((num_nodes,), jnp.float32).at[dst].add(1.0)
    inv_deg = jnp.where(deg > 0, 1.0 / jnp.maximum(deg, 1.0), 0.0)

    a_cat = jnp.zeros((num_nodes, 2 * num_nodes), jnp.float32)
    a_cat = a_cat.at[dst, src].add(1.0 - u)
    a_cat = a_cat.at[dst, src + num_nodes].add(u)
    a_cat = a_cat * inv_deg[:, None]
    return a_cat.astype(jnp.bfloat16)


# ----------------------------------------------------------------------------
# Full forward
# ----------------------------------------------------------------------------
def net_forward(x, edge_index, edge_attr, params, *, tm=64, tk=128):
    # Tile sizes: tm rows of output per step, tk columns of A_cat per k step.
    # Demo uses (64, 128).  At real Cora scale pick e.g. (256, 1024) on v5e/v6e
    # (128 MiB VMEM) and (256, 512) on v7x (64 MiB VMEM) — A tile bf16 is
    # tm*tk*2 bytes per buffer, double-buffered.
    a_cat = build_spline_adjacency(edge_index, edge_attr, x.shape[0])

    t1 = feature_transform(x, params["w_stk_1"], tm=tm)
    h = spline_conv_layer(a_cat, t1, params["b1"], activation="elu", tm=tm, tk=tk)

    t2 = feature_transform(h, params["w_stk_2"], tm=tm)
    out = spline_conv_layer(a_cat, t2, params["b2"], activation="log_softmax",
                            tm=tm, tk=tk)
    return out


def reference_forward(x, edge_index, edge_attr, params):
    """Pure-JAX reference (same bf16-rounded adjacency, f32 math)."""
    n = x.shape[0]
    a_cat = build_spline_adjacency(edge_index, edge_attr, n).astype(jnp.float32)
    a0, a1 = a_cat[:, :n], a_cat[:, n:]

    def layer(h, w_stk, b):
        return a0 @ (h @ w_stk[0]) + a1 @ (h @ w_stk[1]) + h @ w_stk[2] + b

    h = layer(x, params["w_stk_1"], params["b1"])
    h = jnp.where(h > 0, h, jnp.expm1(jnp.minimum(h, 0.0)))
    z = layer(h, params["w_stk_2"], params["b2"])
    return jax.nn.log_softmax(z, axis=1)


def init_params(key, num_features, hidden, num_classes):
    ks = jax.random.split(key, 2)
    s1 = 1.0 / jnp.sqrt(num_features)
    s2 = 1.0 / jnp.sqrt(hidden)
    return {
        # conv1: stacked [W0, W1, W_root] : (3, F_in, 16)
        "w_stk_1": (jax.random.normal(ks[0], (3, num_features, hidden)) * s1
                    ).astype(jnp.float32),
        "b1": jnp.zeros((1, hidden), jnp.float32),
        # conv2: stacked [W0, W1, W_root] : (3, 16, C)
        "w_stk_2": (jax.random.normal(ks[1], (3, hidden, num_classes)) * s2
                    ).astype(jnp.float32),
        "b2": jnp.zeros((1, num_classes), jnp.float32),
    }


if __name__ == "__main__":
    # Small synthetic "Cora-like" graph (sizes chosen so the demo exercises a
    # real 2x2 grid: 2 row tiles x 2 k-reduction tiles).
    N, F_IN, HID, C, E = 128, 32, 16, 8, 512
    TM, TK = 64, 128

    key = jax.random.PRNGKey(0)
    k_x, k_src, k_dst, k_attr, k_p = jax.random.split(key, 5)

    x = jax.random.normal(k_x, (N, F_IN), dtype=jnp.float32)
    edge_index = jnp.stack([
        jax.random.randint(k_src, (E,), 0, N),
        jax.random.randint(k_dst, (E,), 0, N),
    ]).astype(jnp.int32)                                              # (2, E)
    edge_attr = jax.random.uniform(k_attr, (E, 1), dtype=jnp.float32)  # u in [0,1)

    params = init_params(k_p, F_IN, HID, C)

    # NOTE: F.dropout is identity at inference time, so it is a no-op here.
    out = net_forward(x, edge_index, edge_attr, params, tm=TM, tk=TK)
    out = jax.block_until_ready(out)

    ref = reference_forward(x, edge_index, edge_attr, params)
    assert out.shape == (N, C)
    assert jnp.allclose(out, ref, atol=1e-4, rtol=1e-3), "mismatch vs JAX reference"
    # log_softmax rows should sum (in prob space) to 1
    assert jnp.allclose(jnp.sum(jnp.exp(out), axis=1), 1.0, atol=1e-4)

    print("KERNEL_OK")
</pallas_src>

<mosaic_0001>
module attributes {stable_mosaic.version = 11 : i64} {
  func.func @transform_kernel(%arg0: i32, %arg1: i32, %arg2: memref<64x32xf32, #tpu.memory_space<vmem>>, %arg3: memref<1x32x16xf32, #tpu.memory_space<vmem>>, %arg4: memref<1x64x16xf32, #tpu.memory_space<vmem>>) attributes {dimension_semantics = [#tpu.dimension_semantics<parallel>, #tpu.dimension_semantics<arbitrary>], iteration_bounds = array<i64: 2, 3>, scalar_prefetch = 0 : i64, scratch_operands = 0 : i64, tpu.core_type = #tpu.core_type<tc>, window_params = [{transform_indices = @transform_0, window_bounds = array<i64: 64, 32>}, {transform_indices = @transform_1, window_bounds = array<i64: 1, 32, 16>}, {transform_indices = @transform_2, window_bounds = array<i64: 1, 64, 16>}]} {
    %c0 = arith.constant 0 : index
    %c0_0 = arith.constant 0 : index
    %0 = vector.load %arg2[%c0, %c0_0] : memref<64x32xf32, #tpu.memory_space<vmem>>, vector<64x32xf32>
    %c0_1 = arith.constant 0 : index
    %c0_2 = arith.constant 0 : index
    %c0_3 = arith.constant 0 : index
    %1 = vector.load %arg3[%c0_1, %c0_2, %c0_3] : memref<1x32x16xf32, #tpu.memory_space<vmem>>, vector<1x32x16xf32>
    %2 = vector.shape_cast %1 : vector<1x32x16xf32> to vector<32x16xf32>
    %cst = arith.constant dense<0.000000e+00> : vector<64x16xf32>
    %3 = tpu.matmul %0, %2, %cst {dimension_numbers = #tpu.dot_dimension_numbers<[1], [0], [0], [1], [0, 0, 1, 1], [], []>} : vector<64x32xf32>, vector<32x16xf32>, vector<64x16xf32> -> vector<64x16xf32>
    %c0_4 = arith.constant 0 : index
    %c0_5 = arith.constant 0 : index
    %c0_6 = arith.constant 0 : index
    %4 = vector.load %arg4[%c0_4, %c0_5, %c0_6] : memref<1x64x16xf32, #tpu.memory_space<vmem>>, vector<1x64x16xf32>
    %5 = vector.shape_cast %4 : vector<1x64x16xf32> to vector<64x16xf32>
    %6 = vector.shape_cast %3 : vector<64x16xf32> to vector<1x64x16xf32>
    tpu.vector_store %arg4[%c0_4, %c0_5, %c0_6], %6 {strides = array<i32>} : memref<1x64x16xf32, #tpu.memory_space<vmem>>, vector<1x64x16xf32>,
    return
  }
  func.func @transform_0(%arg0: i32, %arg1: i32) -> (i32, i32) {
    %c0_i32 = arith.constant 0 : i32
    %c0_i32_0 = arith.constant 0 : i32
    return %arg0, %c0_i32 : i32, i32
  }
  func.func @transform_1(%arg0: i32, %arg1: i32) -> (i32, i32, i32) {
    %c0_i32 = arith.constant 0 : i32
    %c0_i32_0 = arith.constant 0 : i32
    %c0_i32_1 = arith.constant 0 : i32
    return %arg1, %c0_i32, %c0_i32_0 : i32, i32, i32
  }
  func.func @transform_2(%arg0: i32, %arg1: i32) -> (i32, i32, i32) {
    %c0_i32 = arith.constant 0 : i32
    %c0_i32_0 = arith.constant 0 : i32
    return %arg1, %arg0, %c0_i32 : i32, i32, i32
  }
}

</mosaic_0001>

<bundles_post_ra>
// kernel: tpu_custom_call.1
= control target key start
LH: loop header
LB: loop body
LE: loop exit
PB: predicated region body
PF: predicated region fallthrough
CT: control target
= control target key end

     0   :  { %s598_s9 = smov 0   ;;  %s600_s10 = smov 0   ;;  %s671_s0 = inlined_call_operand.vmem [shape: f32[128,32], index: 0, kind: input, shape index: {}]   ;;  %s672_s1 = inlined_call_operand.vmem [shape: f32[3,32,16], index: 1, kind: input, shape index: {}]   ;;  %s673_s2 = inlined_call_operand.vmem [shape: f32[3,128,16], index: 2, kind: output, shape index: {}]  }
   0x1   :  { %s602_s11 = smov 0   ;;  %s604_s12 = smov 0  }
   0x2   :  { %s606_s13 = smov 0  }
   0x3 LB: > { %s21_s14 = sadd.s32 1, %s573_s11  ;;  %s24_s15 = sadd.s32 1, %s577_s12  ;;  %s581_s13 = sphi %s606_s13, %s12_s13   ;;  %s577_s12 = sphi %s604_s12, %s677_s12   ;;  %s573_s11 = sphi %s602_s11, %s676_s11   ;;  %s569_s10 = sphi %s600_s10, %s675_s10   ;;  %s565_s9 = sphi %s598_s9, %s674_s9  }
   0x4   : > { %p22_p0 = scmp.ge.s32.totalorder %s21_s14, 3  ;;  %p440_p1 = scmp.ge.s32.totalorder %s581_s13, 1 }
   0x5   : > { %p137_p2 = scmp.lt.s32.totalorder %s581_s13, 7 }
   0x6   : > { %s679_s14 = smov (%p22_p0, %s21_s14), 0  ;;  %s681_s15 = smov (!%p22_p0, %s24_s15), %s577_s12 }
   0x7   : > { %p138_p3 = pnand %p440_p1, %p137_p2  ;;  %p26_p4 = scmp.ge.s32.totalorder %s681_s15, 2 }
   0x8   : > { %s441_s16 = sshll.u32 (!%p138_p3), %s569_s10, 3  ;;  %p174_p5 = scmp.lt.s32.totalorder (!%p138_p3), %s565_s9, 2  ;;  %vm201_vm0 = vcmask (!%p138_p3), 261120   ;;  %vm331_vm1 = vcmask (!%p138_p3), 130048  }
   0x9   : > { %s683_s15 = smov (%p26_p4, %s681_s15), 0  ;;  %141 = sbr.rel (%p138_p3) target bundleno = 248 (0xf8), region = 28 }
   0xa   : > { %p169_p6 = scmp.lt.s32.totalorder (!%p138_p3), %s441_s16, 15 }
  0x10   : > { %s685_s9 = smov (!%p174_p5, %s565_s9), 2  ;;  %s687_s16 = smov (!%p169_p6, %s441_s16), 15 }
  0x11   : > { %s458_s17 = sshll.u32 %s685_s9, 5  ;;  %s446_s18 = sshll.u32 %s685_s9, 4 }
  0x12   : > { %s178_s21 = scalar_lea.vmem %s672_s1, %s458_s17  ;;  %s631_s22 = sadd.s32 %s446_s18, %s687_s16 }
  0x13   : > { %v197_v0 = vld [vmem:[%s178_s21] sm:$0xff]  ;;  %v198_v1 = vld [vmem:[%s178_s21 + $0x8] sm:$0xff]  ;;  %v199_v2 = vld [vmem:[%s178_s21 + $0x10] sm:$0xff]  ;;  %s442_s23 = sshll.u32 %s687_s16, 3  ;;  %s447_s27 = sshll.u32 %s631_s22, 3 }
  0x14   : > { %v491_v3 = vpack.c.bf16 %v198_v1, %v197_v0  ;;  %v200_v4 = vld [vmem:[%s178_s21 + $0x18] sm:$0xff]  ;;  %s172_s26 = scalar_lea.vmem %s671_s0, %s442_s23  ;;  %s187_s30 = scalar_lea.vmem %s673_s2, %s447_s27 }
  0x15   : > { %v495_v5 = vpack.c.bf16 %v200_v4, %v199_v2  ;;  %v189_v6 = vld [vmem:[%s172_s26] sm:$0xff]  ;;  %v190_v8 = vld [vmem:[%s172_s26 + $0x8] sm:$0xff]  ;;  %v191_v10 = vld [vmem:[%s172_s26 + $0x10] sm:$0xff] }
  0x16   : > { %492 = vmatprep.subr.bf16.mxu0 %v491_v3  ;;  %499 = vmatprep.subr.bf16.mxu1 %v491_v3  ;;  %v193_v7 = vld [vmem:[%s172_s26 + $0x20] sm:$0xff]  ;;  %v194_v9 = vld [vmem:[%s172_s26 + $0x28] sm:$0xff]  ;;  %v195_v11 = vld [vmem:[%s172_s26 + $0x30] sm:$0xff] }
  0x17   : > { %494 = vmatpush3.bf16.msra.mxu0 %v491_v3  ;;  %501 = vmatpush3.bf16.msra.mxu1 %v491_v3  ;;  %v192_v12 = vld [vmem:[%s172_s26 + $0x18] sm:$0xff] }
  0x18   : > { %496 = vmatprep.subr.bf16.mxu0 %v495_v5  ;;  %500 = vmatprep.subr.bf16.mxu1 %v495_v5  ;;  %v196_v13 = vld [vmem:[%s172_s26 + $0x38] sm:$0xff] }
  0x19   : > { %479 = vmatprep.mubr.msk.f32.mxu0 %vm201_vm0, %v189_v6  ;;  %485 = vmatprep.mubr.msk.f32.mxu1 %vm201_vm0, %v193_v7 }
  0x1b   : > { %498 = vmatpush3.bf16.msra.mxu0 %v495_v5  ;;  %502 = vmatpush3.bf16.msra.mxu1 %v495_v5 }
  0x1e   : > { %480 = vmatmul.mubr.msk.f32.vlgmr.msra.gmra.mrb[0].mxu0 %vm201_vm0, %v190_v8  ;;  %486 = vmatmul.mubr.msk.f32.vlgmr.msra.gmra.mrb[0].mxu1 %vm201_vm0, %v194_v9 }
  0x1f   : > { %482 = vmatprep.mubr.msk.f32.mxu0 %vm201_vm0, %v191_v10  ;;  %488 = vmatprep.mubr.msk.f32.mxu1 %vm201_vm0, %v195_v11 }
  0x22   : > { %483 = vmatmul.mubr.msk.f32.gmra.mrb[2].mxu0 %vm201_vm0, %v192_v12  ;;  %489 = vmatmul.mubr.msk.f32.gmra.mrb[2].mxu1 %vm201_vm0, %v196_v13 }
  0xf1   : > { %v481_v14 = vpop.f32.mrb[0].mxu0  ;;  %v487_v15 = vpop.f32.mrb[0].mxu1 }
  0xf2   : > { %333 = vst.msk [vmem:[%s187_s30 + $0x8] sm:$0xff] %vm331_vm1, %v481_v14  ;;  %337 = vst.msk [vmem:[%s187_s30 + $0x28] sm:$0xff] %vm331_vm1, %v487_v15  ;;  %v292_v16 = vpop.f32.mrb[1].mxu0  ;;  %v312_v17 = vpop.f32.mrb[1].mxu1 }
  0xf3   : > { %332 = vst.msk [vmem:[%s187_s30] sm:$0xff] %vm331_vm1, %v292_v16  ;;  %336 = vst.msk [vmem:[%s187_s30 + $0x20] sm:$0xff] %vm331_vm1, %v312_v17 }
  0xf5   : > { %v484_v18 = vpop.f32.mrb[2].mxu0  ;;  %v490_v19 = vpop.f32.mrb[2].mxu1 }
  0xf6   : > { %335 = vst.msk [vmem:[%s187_s30 + $0x18] sm:$0xff] %vm331_vm1, %v484_v18  ;;  %339 = vst.msk [vmem:[%s187_s30 + $0x38] sm:$0xff] %vm331_vm1, %v490_v19  ;;  %v302_v20 = vpop.f32.mrb[3].mxu0  ;;  %v322_v21 = vpop.f32.mrb[3].mxu1 }
  0xf7   : > { %334 = vst.msk [vmem:[%s187_s30 + $0x10] sm:$0xff] %vm331_vm1, %v302_v20  ;;  %338 = vst.msk [vmem:[%s187_s30 + $0x30] sm:$0xff] %vm331_vm1, %v322_v21 }
  0xf8 PF: > { %s12_s13 = sadd.s32 1, %s581_s13   ;;  %s674_s9 = smov %s573_s11 }
  0xf9   : > { %p9_p7 = scmp.ge.s32.totalorder %s12_s13, 8   ;;  %s675_s10 = smov %s577_s12 }
  0xfa   : > { %s676_s11 = smov %s679_s14  ;;  %s677_s12 = smov %s683_s15 }
  0xfb   :  { %11 = sbr.rel (!%p9_p7) target bundleno = 3 (0x3), region = 61 }

</bundles_post_ra>
